<compile_context>
chip_gen: v5e
topology: v5e:2x2
jax: 0.10.0
libtpu: 0.0.40
codegen_flags: <defaults>
</compile_context>

<pallas_src>
import math

import jax
import jax.numpy as jnp
from jax.experimental import pallas as pl
from jax.experimental.pallas import tpu as pltpu

HIDDEN = 64          # logical hidden width of the PyTorch module
HIDDEN_PAD = 128     # lane-padded hidden width used inside the kernel


def _round_up(x, m):
    return ((x + m - 1) // m) * m


def _pad_to(a, shape):
    pads = [(0, t - s) for s, t in zip(a.shape, shape)]
    if all(p == (0, 0) for p in pads):
        return a                      # no-op: avoid an extra HBM copy
    return jnp.pad(a, pads)


def _critic_kernel(obs_ref, act_ref, w1o_ref, w1a_ref, b1_ref,
                   w2_ref, b2_ref, w3_ref, b3_ref, o_ref):
    cdt = w1o_ref.dtype
    # Activations arrive straight from HBM in f32; cast on the VPU here (free
    # slot) instead of a separate host-side astype pass over the whole batch.
    obs = obs_ref[...].astype(cdt)
    act = act_ref[...].astype(cdt)

    # Layer 1 with fused concat: cat(obs, act) @ W1 == obs @ W1_obs + act @ W1_act
    h1 = (jnp.dot(obs, w1o_ref[...], preferred_element_type=jnp.float32)
          + jnp.dot(act, w1a_ref[...], preferred_element_type=jnp.float32)
          + b1_ref[...])
    h1 = jnp.maximum(h1, 0.0)                                   # relu(dense1)

    # Layer 2 (f32 accumulation + f32 bias/ReLU epilogue)
    h2 = jnp.dot(h1.astype(cdt), w2_ref[...],
                 preferred_element_type=jnp.float32) + b2_ref[...]
    h2 = jnp.maximum(h2, 0.0)                                   # relu(dense2)

    # Layer 3 (no nonlinearity)
    out = jnp.dot(h2.astype(cdt), w3_ref[...],
                  preferred_element_type=jnp.float32) + b3_ref[...]
    o_ref[...] = out.astype(o_ref.dtype)                        # dense3


def critic_forward(obs, action, params, *, block_rows=2048,
                   compute_dtype=jnp.bfloat16):
    """Pallas implementation of CriticNetwork.forward(obs, action)."""
    batch, obs_dim = obs.shape
    act_dim = action.shape[1]
    out_dim = params["w3"].shape[1]
    H = HIDDEN_PAD

    # --- pack weights: zero-pad hidden 64 -> 128 lanes, cast matmul operands.
    # Tiny, one-time ops (constant-fold under jit when params are constants).
    w1o = _pad_to(params["w1_obs"], (obs_dim, H)).astype(compute_dtype)
    w1a = _pad_to(params["w1_act"], (act_dim, H)).astype(compute_dtype)
    b1 = _pad_to(params["b1"], (1, H))                 # biases stay f32
    w2 = _pad_to(params["w2"], (H, H)).astype(compute_dtype)
    b2 = _pad_to(params["b2"], (1, H))
    w3 = _pad_to(params["w3"], (H, out_dim)).astype(compute_dtype)
    b3 = params["b3"]

    # --- batch tiling ---
    block_rows = max(16, _round_up(block_rows, 16))    # robust tm (sublane packing)
    b16 = _round_up(batch, 16)                         # minimal pad (< 16 rows)
    n_tiles = pl.cdiv(b16, block_rows)
    if b16 >= 256:
        # v7x has 2 TensorCores: make sure the parallel batch axis has >= 2
        # grid steps whenever the batch is big enough to split.
        n_tiles = max(n_tiles, 2)
    tm = _round_up(pl.cdiv(b16, n_tiles), 16)          # bounds dead rows to <16/tile
    padded_b = tm * n_tiles

    obs_p = _pad_to(obs, (padded_b, obs_dim))          # f32, no host astype
    act_p = _pad_to(action, (padded_b, act_dim))

    row = lambda i: (i, 0)      # batch-streamed operands
    fixed = lambda i: (0, 0)    # VMEM-resident weights / biases

    out = pl.pallas_call(
        _critic_kernel,
        out_shape=jax.ShapeDtypeStruct((padded_b, out_dim), jnp.float32),
        grid=(n_tiles,),
        in_specs=[
            pl.BlockSpec((tm, obs_dim), row),
            pl.BlockSpec((tm, act_dim), row),
            pl.BlockSpec((obs_dim, H), fixed),
            pl.BlockSpec((act_dim, H), fixed),
            pl.BlockSpec((1, H), fixed),
            pl.BlockSpec((H, H), fixed),
            pl.BlockSpec((1, H), fixed),
            pl.BlockSpec((H, out_dim), fixed),
            pl.BlockSpec((1, out_dim), fixed),
        ],
        out_specs=pl.BlockSpec((tm, out_dim), row),
        compiler_params=pltpu.CompilerParams(
            dimension_semantics=("parallel",)),
    )(obs_p, act_p, w1o, w1a, b1, w2, b2, w3, b3)

    return out[:batch]


def init_params(key, obs_dim, act_dim, out_dim):
    """PyTorch nn.Linear-style init; W1 pre-split into obs/action halves."""
    def linear(key, fan_in, fan_out):
        kw, kb = jax.random.split(key)
        bound = 1.0 / math.sqrt(fan_in)
        # stored as [in, out] (transposed w.r.t. torch's [out, in])
        w = jax.random.uniform(kw, (fan_in, fan_out), jnp.float32, -bound, bound)
        b = jax.random.uniform(kb, (1, fan_out), jnp.float32, -bound, bound)
        return w, b

    k1, k2, k3 = jax.random.split(key, 3)
    in_dim = obs_dim + act_dim
    w1, b1 = linear(k1, in_dim, HIDDEN)
    w2, b2 = linear(k2, HIDDEN, HIDDEN)
    w3, b3 = linear(k3, HIDDEN, out_dim)
    return {
        "w1_obs": w1[:obs_dim], "w1_act": w1[obs_dim:], "b1": b1,
        "w2": w2, "b2": b2,
        "w3": w3, "b3": b3,
    }


def reference_forward(obs, action, params):
    """Pure-JAX (f32) reference of the PyTorch forward, for correctness check."""
    x = jnp.concatenate((obs, action), axis=-1)
    w1 = jnp.concatenate((params["w1_obs"], params["w1_act"]), axis=0)
    h1 = jax.nn.relu(x @ w1 + params["b1"])
    h2 = jax.nn.relu(h1 @ params["w2"] + params["b2"])
    return h2 @ params["w3"] + params["b3"]


def critic_forward_auto(obs, action, params, *, min_pallas_batch=256, **kw):
    """Wrapper-level dispatch: tiny batches are launch/step-overhead dominated,
    so fall back to XLA's fused dot chain; use the Pallas kernel for large ones."""
    if obs.shape[0] < min_pallas_batch:
        return reference_forward(obs, action, params)
    return critic_forward(obs, action, params, **kw)


if __name__ == "__main__":
    key = jax.random.PRNGKey(0)
    k_obs, k_act, k_params = jax.random.split(key, 3)

    batch = 8
    obs_dim = 24
    act_dim = 8          # dense1 input_dim = obs_dim + act_dim = 32
    out_dim = 4

    obs = jax.random.normal(k_obs, (batch, obs_dim), jnp.float32)
    action = jax.random.normal(k_act, (batch, act_dim), jnp.float32)
    params = init_params(k_params, obs_dim, act_dim, out_dim)

    # Call the Pallas path directly so the kernel is exercised even at this
    # demo-sized batch (production code would use critic_forward_auto).
    out = critic_forward(obs, action, params)
    out = jax.block_until_ready(out)

    ref = reference_forward(obs, action, params)
    assert out.shape == (batch, out_dim), out.shape
    # bf16 matmul operands with f32 accumulation: loosened tolerance vs f32 ref.
    assert jnp.allclose(out, ref, atol=5e-2, rtol=5e-2), "mismatch vs reference"

    print("KERNEL_OK")
</pallas_src>

<mosaic_0001>
module attributes {stable_mosaic.version = 11 : i64} {
  func.func @_critic_kernel(%arg0: i32, %arg1: memref<16x24xf32, #tpu.memory_space<vmem>>, %arg2: memref<16x8xf32, #tpu.memory_space<vmem>>, %arg3: memref<24x128xbf16, #tpu.memory_space<vmem>>, %arg4: memref<8x128xbf16, #tpu.memory_space<vmem>>, %arg5: memref<1x128xf32, #tpu.memory_space<vmem>>, %arg6: memref<128x128xbf16, #tpu.memory_space<vmem>>, %arg7: memref<1x128xf32, #tpu.memory_space<vmem>>, %arg8: memref<128x4xbf16, #tpu.memory_space<vmem>>, %arg9: memref<1x4xf32, #tpu.memory_space<vmem>>, %arg10: memref<16x4xf32, #tpu.memory_space<vmem>>) attributes {dimension_semantics = [#tpu.dimension_semantics<parallel>], iteration_bounds = array<i64: 1>, scalar_prefetch = 0 : i64, scratch_operands = 0 : i64, tpu.core_type = #tpu.core_type<tc>, window_params = [{transform_indices = @transform_0, window_bounds = array<i64: 16, 24>}, {transform_indices = @transform_1, window_bounds = array<i64: 16, 8>}, {pipeline_mode = #tpu.pipeline_mode<synchronous>, transform_indices = @transform_2, window_bounds = array<i64: 24, 128>}, {pipeline_mode = #tpu.pipeline_mode<synchronous>, transform_indices = @transform_3, window_bounds = array<i64: 8, 128>}, {pipeline_mode = #tpu.pipeline_mode<synchronous>, transform_indices = @transform_4, window_bounds = array<i64: 1, 128>}, {pipeline_mode = #tpu.pipeline_mode<synchronous>, transform_indices = @transform_5, window_bounds = array<i64: 128, 128>}, {pipeline_mode = #tpu.pipeline_mode<synchronous>, transform_indices = @transform_6, window_bounds = array<i64: 1, 128>}, {pipeline_mode = #tpu.pipeline_mode<synchronous>, transform_indices = @transform_7, window_bounds = array<i64: 128, 4>}, {pipeline_mode = #tpu.pipeline_mode<synchronous>, transform_indices = @transform_8, window_bounds = array<i64: 1, 4>}, {transform_indices = @transform_9, window_bounds = array<i64: 16, 4>}]} {
    %c0 = arith.constant 0 : index
    %c0_0 = arith.constant 0 : index
    %0 = vector.load %arg1[%c0, %c0_0] : memref<16x24xf32, #tpu.memory_space<vmem>>, vector<16x24xf32>
    %1 = arith.truncf %0 : vector<16x24xf32> to vector<16x24xbf16>
    %c0_1 = arith.constant 0 : index
    %c0_2 = arith.constant 0 : index
    %2 = vector.load %arg2[%c0_1, %c0_2] : memref<16x8xf32, #tpu.memory_space<vmem>>, vector<16x8xf32>
    %3 = arith.truncf %2 : vector<16x8xf32> to vector<16x8xbf16>
    %c0_3 = arith.constant 0 : index
    %c0_4 = arith.constant 0 : index
    %4 = vector.load %arg3[%c0_3, %c0_4] : memref<24x128xbf16, #tpu.memory_space<vmem>>, vector<24x128xbf16>
    %cst = arith.constant dense<0.000000e+00> : vector<16x128xf32>
    %5 = tpu.matmul %1, %4, %cst {dimension_numbers = #tpu.dot_dimension_numbers<[1], [0], [0], [1], [0, 0, 1, 1], [], []>} : vector<16x24xbf16>, vector<24x128xbf16>, vector<16x128xf32> -> vector<16x128xf32>
    %c0_5 = arith.constant 0 : index
    %c0_6 = arith.constant 0 : index
    %6 = vector.load %arg4[%c0_5, %c0_6] : memref<8x128xbf16, #tpu.memory_space<vmem>>, vector<8x128xbf16>
    %cst_7 = arith.constant dense<0.000000e+00> : vector<16x128xf32>
    %7 = tpu.matmul %3, %6, %cst_7 {dimension_numbers = #tpu.dot_dimension_numbers<[1], [0], [0], [1], [0, 0, 1, 1], [], []>} : vector<16x8xbf16>, vector<8x128xbf16>, vector<16x128xf32> -> vector<16x128xf32>
    %8 = arith.addf %5, %7 : vector<16x128xf32>
    %c0_8 = arith.constant 0 : index
    %c0_9 = arith.constant 0 : index
    %9 = vector.load %arg5[%c0_8, %c0_9] : memref<1x128xf32, #tpu.memory_space<vmem>>, vector<1x128xf32>
    %10 = vector.broadcast %9 : vector<1x128xf32> to vector<16x128xf32>
    %11 = arith.addf %8, %10 : vector<16x128xf32>
    %cst_10 = arith.constant 0.000000e+00 : f32
    %12 = vector.broadcast %cst_10 : f32 to vector<16x128xf32>
    %13 = arith.maximumf %11, %12 : vector<16x128xf32>
    %14 = arith.truncf %13 : vector<16x128xf32> to vector<16x128xbf16>
    %c0_11 = arith.constant 0 : index
    %c0_12 = arith.constant 0 : index
    %15 = vector.load %arg6[%c0_11, %c0_12] : memref<128x128xbf16, #tpu.memory_space<vmem>>, vector<128x128xbf16>
    %cst_13 = arith.constant dense<0.000000e+00> : vector<16x128xf32>
    %16 = tpu.matmul %14, %15, %cst_13 {dimension_numbers = #tpu.dot_dimension_numbers<[1], [0], [0], [1], [0, 0, 1, 1], [], []>} : vector<16x128xbf16>, vector<128x128xbf16>, vector<16x128xf32> -> vector<16x128xf32>
    %c0_14 = arith.constant 0 : index
    %c0_15 = arith.constant 0 : index
    %17 = vector.load %arg7[%c0_14, %c0_15] : memref<1x128xf32, #tpu.memory_space<vmem>>, vector<1x128xf32>
    %18 = vector.broadcast %17 : vector<1x128xf32> to vector<16x128xf32>
    %19 = arith.addf %16, %18 : vector<16x128xf32>
    %cst_16 = arith.constant 0.000000e+00 : f32
    %20 = vector.broadcast %cst_16 : f32 to vector<16x128xf32>
    %21 = arith.maximumf %19, %20 : vector<16x128xf32>
    %22 = arith.truncf %21 : vector<16x128xf32> to vector<16x128xbf16>
    %c0_17 = arith.constant 0 : index
    %c0_18 = arith.constant 0 : index
    %23 = vector.load %arg8[%c0_17, %c0_18] : memref<128x4xbf16, #tpu.memory_space<vmem>>, vector<128x4xbf16>
    %cst_19 = arith.constant dense<0.000000e+00> : vector<16x4xf32>
    %24 = tpu.matmul %22, %23, %cst_19 {dimension_numbers = #tpu.dot_dimension_numbers<[1], [0], [0], [1], [0, 0, 1, 1], [], []>} : vector<16x128xbf16>, vector<128x4xbf16>, vector<16x4xf32> -> vector<16x4xf32>
    %c0_20 = arith.constant 0 : index
    %c0_21 = arith.constant 0 : index
    %25 = vector.load %arg9[%c0_20, %c0_21] : memref<1x4xf32, #tpu.memory_space<vmem>>, vector<1x4xf32>
    %26 = vector.broadcast %25 : vector<1x4xf32> to vector<16x4xf32>
    %27 = arith.addf %24, %26 : vector<16x4xf32>
    %c0_22 = arith.constant 0 : index
    %c0_23 = arith.constant 0 : index
    %28 = vector.load %arg10[%c0_22, %c0_23] : memref<16x4xf32, #tpu.memory_space<vmem>>, vector<16x4xf32>
    tpu.vector_store %arg10[%c0_22, %c0_23], %27 {strides = array<i32>} : memref<16x4xf32, #tpu.memory_space<vmem>>, vector<16x4xf32>,
    return
  }
  func.func @transform_0(%arg0: i32) -> (i32, i32) {
    %c0_i32 = arith.constant 0 : i32
    %c0_i32_0 = arith.constant 0 : i32
    return %arg0, %c0_i32 : i32, i32
  }
  func.func @transform_1(%arg0: i32) -> (i32, i32) {
    %c0_i32 = arith.constant 0 : i32
    %c0_i32_0 = arith.constant 0 : i32
    return %arg0, %c0_i32 : i32, i32
  }
  func.func @transform_2(%arg0: i32) -> (i32, i32) {
    %c0_i32 = arith.constant 0 : i32
    %c0_i32_0 = arith.constant 0 : i32
    %c0_i32_1 = arith.constant 0 : i32
    return %c0_i32, %c0_i32_0 : i32, i32
  }
  func.func @transform_3(%arg0: i32) -> (i32, i32) {
    %c0_i32 = arith.constant 0 : i32
    %c0_i32_0 = arith.constant 0 : i32
    %c0_i32_1 = arith.constant 0 : i32
    return %c0_i32, %c0_i32_0 : i32, i32
  }
  func.func @transform_4(%arg0: i32) -> (i32, i32) {
    %c0_i32 = arith.constant 0 : i32
    %c0_i32_0 = arith.constant 0 : i32
    %c0_i32_1 = arith.constant 0 : i32
    return %c0_i32, %c0_i32_0 : i32, i32
  }
  func.func @transform_5(%arg0: i32) -> (i32, i32) {
    %c0_i32 = arith.constant 0 : i32
    %c0_i32_0 = arith.constant 0 : i32
    %c0_i32_1 = arith.constant 0 : i32
    return %c0_i32, %c0_i32_0 : i32, i32
  }
  func.func @transform_6(%arg0: i32) -> (i32, i32) {
    %c0_i32 = arith.constant 0 : i32
    %c0_i32_0 = arith.constant 0 : i32
    %c0_i32_1 = arith.constant 0 : i32
    return %c0_i32, %c0_i32_0 : i32, i32
  }
  func.func @transform_7(%arg0: i32) -> (i32, i32) {
    %c0_i32 = arith.constant 0 : i32
    %c0_i32_0 = arith.constant 0 : i32
    %c0_i32_1 = arith.constant 0 : i32
    return %c0_i32, %c0_i32_0 : i32, i32
  }
  func.func @transform_8(%arg0: i32) -> (i32, i32) {
    %c0_i32 = arith.constant 0 : i32
    %c0_i32_0 = arith.constant 0 : i32
    %c0_i32_1 = arith.constant 0 : i32
    return %c0_i32, %c0_i32_0 : i32, i32
  }
  func.func @transform_9(%arg0: i32) -> (i32, i32) {
    %c0_i32 = arith.constant 0 : i32
    %c0_i32_0 = arith.constant 0 : i32
    return %arg0, %c0_i32 : i32, i32
  }
}

</mosaic_0001>

<bundles_post_ra>
// kernel: tpu_custom_call.1
= control target key start
LH: loop header
LB: loop body
LE: loop exit
PB: predicated region body
PF: predicated region fallthrough
CT: control target
= control target key end

     0   :  { %14 = vsyncpa [#allocation3], 0  ;;  %s414_s12 = smov [#allocation2]   ;;  %s415_s14 = smov 64   ;;  %s548_s0 = inlined_call_operand.vmem [shape: f32[16,24], index: 0, kind: input, shape index: {}]   ;;  %s549_s1 = inlined_call_operand.vmem [shape: f32[16,8], index: 1, kind: input, shape index: {}]   ;;  %s550_s2 = inlined_call_operand.hbm [shape: bf16[24,128], index: 2, kind: input, shape index: {}]   ;;  %s551_s3 = inlined_call_operand.vmem [shape: bf16[8,128], index: 3, kind: input, shape index: {}]   ;;  %s552_s4 = inlined_call_operand.vmem [shape: f32[1,128], index: 4, kind: input, shape index: {}]   ;;  %s553_s5 = inlined_call_operand.vmem [shape: bf16[128,128], index: 5, kind: input, shape index: {}]   ;;  %s554_s6 = inlined_call_operand.vmem [shape: f32[1,128], index: 6, kind: input, shape index: {}]   ;;  %s555_s7 = inlined_call_operand.vmem [shape: bf16[128,4], index: 7, kind: input, shape index: {}]   ;;  %s556_s8 = inlined_call_operand.vmem [shape: f32[1,4], index: 8, kind: input, shape index: {}]   ;;  %s557_s9 = inlined_call_operand.vmem [shape: f32[16,4], index: 9, kind: output, shape index: {}]  }
   0x1   :  { %s23_s11 = sshll.u32 %s550_s2, 4  ;;  %s25_s13 = sshll.u32 %s414_s12, 4  ;;  %s24_s11 = int_to_ptr.hbm [resolvable:$true] %s23_s11  ;;  %s26_s13 = int_to_ptr.vmem [resolvable:$true] %s25_s13 }
   0x2   :  { %s416_s15 = smov 4  }
   0x3   :  { %31 = dma.hbm_to_vmem [thread:$0]  %s24_s11, 192, %s26_s13, [#allocation3], %s415_s14, %s415_s14, %s416_s15  }
   0x4   :  { %412 = dma.done.wait [#allocation3], 192  }
   0x5   :  { %413 = vsyncadd [#allocation3], 4294967104  ;;  %vm63_vm0 = vcmask 1043456   ;;  %v58_v0 = vld [vmem:[%s551_s3] sm:$0xf]  ;;  %v53_v2 = vld [vmem:[%s549_s1 + $0x8] sm:$0xff] }
   0x6   :  { %v52_v1 = vld [vmem:[%s549_s1] sm:$0xff]  ;;  %v65_v3 = vsel %vm63_vm0, %v58_v0, 0  ;;  %v57_v5 = vld [vmem:[#allocation2 + $0x8] sm:$0xf]  ;;  %vm59_vm1 = vcmask 64512   ;;  %v373_v7 = vld [vmem:[%s553_s5 + $0x38] sm:$0xff] }
   0x7   :  { %v54_v4 = vpack.c.bf16 %v53_v2, %v52_v1  ;;  %74 = vmatpush.bf16.msra.mxu0 %v65_v3  ;;  %v86_v6 = vunpack.c.l.b16 %v57_v5  ;;  %188 = vmatpush.bf16.msra.mxu2 %v373_v7  ;;  %v372_v9 = vld [vmem:[%s553_s5 + $0x30] sm:$0xff]  ;;  %v365_v11 = vld [vmem:[#allocation2] sm:$0xff]  ;;  %v50_v13 = vld [vmem:[%s548_s0 + $0x8] sm:$0xff]  ;;  %vm90_vm2 = vcmask 195584   ;;  %vm287_vm3 = vcmask 31744  }
   0x8   :  { %v49_v12 = vld [vmem:[%s548_s0] sm:$0xff]  ;;  %v371_v15 = vld [vmem:[%s553_s5 + $0x28] sm:$0xff]  ;;  %v369_v17 = vld [vmem:[%s553_s5 + $0x18] sm:$0xff] }
   0x9   :  { %v88_v8 = vpack.c.b16 %v86_v6, %v86_v6  ;;  %v51_v14 = vpack.c.bf16 %v50_v13, %v49_v12  ;;  %v370_v16 = vld [vmem:[%s553_s5 + $0x20] sm:$0xff]  ;;  %v368_v18 = vld [vmem:[%s553_s5 + $0x10] sm:$0xff]  ;;  %v367_v19 = vld [vmem:[%s553_s5 + $0x8] sm:$0xff] }
   0xa   :  { %295 = vmatmul.msk.bf16.vlgmr.msra.gmra.mxu0 %vm59_vm1, %v54_v4  ;;  %v366_v20 = vld [vmem:[%s553_s5] sm:$0xff]  ;;  %v381_v21 = vld [vmem:[%s555_s7 + $0x38] sm:$0xff]  ;;  %v380_v22 = vld [vmem:[%s555_s7 + $0x30] sm:$0xff] }
   0xb   :  { %v95_v10 = vsel %vm63_vm0, %v88_v8, 0  ;;  %189 = vmatpush.bf16.msra.mxu2 %v372_v9  ;;  %273 = vmatpush.bf16.msra.mxu3 %v381_v21  ;;  %v379_v23 = vld [vmem:[%s555_s7 + $0x28] sm:$0xff]  ;;  %v378_v24 = vld [vmem:[%s555_s7 + $0x20] sm:$0xff]  ;;  %v377_v37 = vld [vmem:[%s555_s7 + $0x18] sm:$0xff] }
   0xc   :  { %103 = vmatpush.bf16.msra.mxu1 %v95_v10  ;;  %v385_v28 = vld [vmem:[%s552_s4] ss:$0 sm:$0xff]  ;;  %v376_v38 = vld [vmem:[%s555_s7 + $0x10] sm:$0xff]  ;;  %v375_v39 = vld [vmem:[%s555_s7 + $0x8] sm:$0xff] }
   0xd   :  { %v374_v40 = vld [vmem:[%s555_s7] sm:$0xff] }
   0xe   :  { %v386_v42 = vld [vmem:[%s554_s6] ss:$0 sm:$0xff] }
   0xf   :  { %190 = vmatpush.bf16.msra.mxu2 %v371_v15  ;;  %274 = vmatpush.bf16.msra.mxu3 %v380_v22  ;;  %v387_v49 = vld [vmem:[%s556_s8] ss:$0 sm:$0xff] }
  0x10   :  { %104 = vmatpush.bf16.msra.mxu1 %v365_v11 }
  0x13   :  { %300 = vmatmul.msk.bf16.vlgmr.msra.gmra.mxu1 %vm90_vm2, %v51_v14  ;;  %191 = vmatpush.bf16.msra.mxu2 %v370_v16 }
  0x14   :  { %275 = vmatpush.bf16.msra.mxu3 %v379_v23 }
  0x17   :  { %192 = vmatpush.bf16.msra.mxu2 %v369_v17 }
  0x18   :  { %276 = vmatpush.bf16.msra.mxu3 %v378_v24 }
  0x1b   :  { %193 = vmatpush.bf16.msra.mxu2 %v368_v18 }
  0x1c   :  { %277 = vmatpush.bf16.msra.mxu3 %v377_v37 }
  0x1f   :  { %194 = vmatpush.bf16.msra.mxu2 %v367_v19 }
  0x20   :  { %278 = vmatpush.bf16.msra.mxu3 %v376_v38 }
  0x23   :  { %195 = vmatpush.bf16.msra.mxu2 %v366_v20 }
  0x24   :  { %279 = vmatpush.bf16.msra.mxu3 %v375_v39 }
  0x28   :  { %280 = vmatpush.bf16.msra.mxu3 %v374_v40 }
  0x87   :  { %v76_v25 = vpop.f32.mrf.mxu0 }
  0x8f   :  { %v78_v29 = vpop.f32.mrf.mxu0 }
  0x90   :  { %v106_v26 = vpop.f32.mrf.mxu1 }
  0x91   :  { %v107_v27 = vadd.f32 %v106_v26, %v76_v25 }
  0x93   :  { %v115_v31 = vadd.f32 %v385_v28, %v107_v27 }
  0x95   :  { %v117_v34 = vmax.f32 %v115_v31, 0.0 }
  0x98   :  { %v108_v30 = vpop.f32.mrf.mxu1 }
  0x99   :  { %v109_v32 = vadd.f32 %v108_v30, %v78_v29 }
  0x9b   :  { %v116_v33 = vadd.f32 %v385_v28, %v109_v32 }
  0x9d   :  { %v118_v35 = vmax.f32 %v116_v33, 0.0 }
  0x9f   :  { %v119_v36 = vpack.c.bf16 %v118_v35, %v117_v34 }
  0xa1   :  { %196 = vmatmul.bf16.vlgmr.msra.gmra.mxu2 %v119_v36 }
 0x124   :  { %v197_v41 = vpop.f32.mrf.mxu2 }
 0x125   :  { %v198_v43 = vadd.f32 %v386_v42, %v197_v41 }
 0x127   :  { %v202_v46 = vmax.f32 %v198_v43, 0.0 }
 0x12c   :  { %v199_v44 = vpop.f32.mrf.mxu2 }
 0x12d   :  { %v200_v45 = vadd.f32 %v386_v42, %v199_v44 }
 0x12f   :  { %v203_v47 = vmax.f32 %v200_v45, 0.0 }
 0x131   :  { %v204_v48 = vpack.c.bf16 %v203_v47, %v202_v46 }
 0x133   :  { %281 = vmatmul.bf16.vlgmr.msra.gmra.mxu3 %v204_v48 }
 0x1b6   :  { %v282_v50 = vpop.f32.mrf.mxu3 }
 0x1b7   :  { %v283_v51 = vadd.f32 %v387_v49, %v282_v50 }
 0x1b9   :  { %288 = vst.msk [vmem:[%s557_s9] sm:$0xff] %vm287_vm3, %v283_v51 }
 0x1be   :  { %v284_v52 = vpop.f32.mrf.mxu3 }
 0x1bf   :  { %v285_v53 = vadd.f32 %v387_v49, %v284_v52 }
 0x1c1   :  { %289 = vst.msk [vmem:[%s557_s9 + $0x8] sm:$0xff] %vm287_vm3, %v285_v53 }
 0x1c2   :  { %294 = vsyncpa [#allocation3], 1 }

</bundles_post_ra>
